<compile_context>
chip_gen: v5e
topology: v5e:2x2
jax: 0.10.0
libtpu: 0.0.40
codegen_flags: <defaults>
</compile_context>

<pallas_src>
import functools

import jax
import jax.numpy as jnp
from jax.experimental import pallas as pl
from jax.experimental.pallas import tpu as pltpu


def _round_up(n, m):
    return ((n + m - 1) // m) * m


def mlp_kernel(x_ref, w1_ref, w2_ref, w3_ref, w4_ref, b_ref, out_ref):
    """Whole 4-layer MLP fused; one invocation per batch tile.

    b_ref packs the biases in lane-aligned slots:
      [0:256) -> b1, [256:320) -> b2 (64), [384:512) -> b3 (128), [512:) -> b4.
    """
    f32 = jnp.float32
    bf16 = jnp.bfloat16

    b1 = b_ref[:, 0:256]
    b2 = b_ref[:, 256:320]
    b3 = b_ref[:, 384:512]
    b4 = b_ref[:, 512:]

    x = x_ref[...].astype(bf16)
    h = jnp.dot(x, w1_ref[...], preferred_element_type=f32) + b1
    h = jnp.maximum(h, 0.0)
    h = jnp.dot(h.astype(bf16), w2_ref[...], preferred_element_type=f32) + b2
    h = jnp.maximum(h, 0.0)
    h = jnp.dot(h.astype(bf16), w3_ref[...], preferred_element_type=f32) + b3
    h = jnp.maximum(h, 0.0)
    y = jnp.dot(h.astype(bf16), w4_ref[...], preferred_element_type=f32) + b4
    out_ref[...] = y.astype(out_ref.dtype)


def pack_params(params):
    """One-time parameter prep (outside the jitted forward):
    cast weights to bf16 and fold the four biases into one lane-aligned buffer."""
    bf16 = jnp.bfloat16
    d_out = params["w4"].shape[1]
    bias_buf = jnp.zeros((1, 512 + d_out), jnp.float32)
    bias_buf = bias_buf.at[:, 0:256].set(params["b1"].astype(jnp.float32))
    bias_buf = bias_buf.at[:, 256:320].set(params["b2"].astype(jnp.float32))
    bias_buf = bias_buf.at[:, 384:512].set(params["b3"].astype(jnp.float32))
    bias_buf = bias_buf.at[:, 512:].set(params["b4"].astype(jnp.float32))
    return {
        "w1": params["w1"].astype(bf16),
        "w2": params["w2"].astype(bf16),
        "w3": params["w3"].astype(bf16),
        "w4": params["w4"].astype(bf16),
        "bias": bias_buf,
    }


@functools.partial(jax.jit, static_argnames=("block_b",))
def mlp_forward(x, packed, *, block_b=1024):
    """x: (B, input_size) f32.  packed: output of pack_params()."""
    w1 = packed["w1"]
    w2 = packed["w2"]
    w3 = packed["w3"]
    w4 = packed["w4"]
    bias = packed["bias"]

    B, d_in = x.shape
    d_out = w4.shape[1]

    # Static tile selection:
    #  * multiple of 16 rows (bf16 sublane packing),
    #  * big enough to amortize the ~0.35us per-grid-step overhead,
    #  * capped so the grid has >= 2 steps when B allows it (v7x megacore).
    tile = min(block_b, _round_up(pl.cdiv(B, 2), 16))
    tile = max(16, _round_up(tile, 16))
    grid = (pl.cdiv(B, tile),)  # partial last block is masked by Pallas

    def resident(arr):
        # Constant block index across the grid -> keep in VMEM, single-buffered.
        return pl.BlockSpec(arr.shape, lambda i: (0, 0),
                            pipeline_mode=pl.Buffered(1))

    flops = 2 * B * (d_in * 256 + 256 * 64 + 64 * 128 + 128 * d_out)
    weight_bytes = 2 * (d_in * 256 + 256 * 64 + 64 * 128 + 128 * d_out)
    bytes_accessed = 4 * B * (d_in + d_out) + weight_bytes + 4 * bias.shape[1]

    out = pl.pallas_call(
        mlp_kernel,
        out_shape=jax.ShapeDtypeStruct((B, d_out), jnp.float32),
        grid_spec=pl.GridSpec(
            grid=grid,
            in_specs=[
                pl.BlockSpec((tile, d_in), lambda i: (i, 0)),   # x tile (no padding)
                resident(w1),
                resident(w2),
                resident(w3),
                resident(w4),
                resident(bias),
            ],
            out_specs=pl.BlockSpec((tile, d_out), lambda i: (i, 0)),  # narrow output
        ),
        compiler_params=pltpu.CompilerParams(
            dimension_semantics=("parallel",),
        ),
        cost_estimate=pl.CostEstimate(
            flops=flops, transcendentals=0, bytes_accessed=bytes_accessed),
    )(x, w1, w2, w3, w4, bias)

    return out


def init_params(key, input_size, output_size):
    """Deterministic init matching the PyTorch layer shapes.
    Weights stored as (in_features, out_features); biases as (1, out_features)."""
    dims = [(input_size, 256), (256, 64), (64, 128), (128, output_size)]
    params = {}
    for idx, (fan_in, fan_out) in enumerate(dims, start=1):
        key, kw, kb = jax.random.split(key, 3)
        bound = 1.0 / jnp.sqrt(fan_in)  # torch.nn.Linear default init scale
        params[f"w{idx}"] = jax.random.uniform(
            kw, (fan_in, fan_out), jnp.float32, -bound, bound)
        params[f"b{idx}"] = jax.random.uniform(
            kb, (1, fan_out), jnp.float32, -bound, bound)
    return params


def mlp_reference(x, params):
    """Pure-JAX reference mimicking the kernel's bf16 MXU inputs / f32 accumulation."""
    f32 = jnp.float32
    bf16 = jnp.bfloat16

    def lin(a, w, b):
        return jnp.dot(a.astype(bf16).astype(f32), w.astype(bf16).astype(f32),
                       preferred_element_type=f32) + b

    h = jnp.maximum(lin(x, params["w1"], params["b1"]), 0.0)
    h = jnp.maximum(lin(h, params["w2"], params["b2"]), 0.0)
    h = jnp.maximum(lin(h, params["w3"], params["b3"]), 0.0)
    return lin(h, params["w4"], params["b4"])


if __name__ == "__main__":
    input_size = 32
    output_size = 16
    batch = 200  # not a multiple of the tile -> exercises the partial-block path

    key = jax.random.PRNGKey(0)
    key, kx = jax.random.split(key)
    x = jax.random.normal(kx, (batch, input_size), jnp.float32)
    params = init_params(key, input_size, output_size)
    packed = pack_params(params)  # one-time prep, hoisted out of the forward

    # batch=200 -> tile=112, grid of 2 steps (pipelining + both v7x TCs).
    out = mlp_forward(x, packed)
    out = jax.block_until_ready(out)

    ref = mlp_reference(x, params)
    assert out.shape == (batch, output_size)
    assert jnp.allclose(out, ref, atol=2e-2, rtol=2e-2), "mismatch vs reference"

    print("KERNEL_OK")
</pallas_src>

<mosaic_0001>
module attributes {stable_mosaic.version = 11 : i64} {
  func.func @mlp_kernel(%arg0: i32, %arg1: memref<112x32xf32, #tpu.memory_space<vmem>>, %arg2: memref<32x256xbf16, #tpu.memory_space<vmem>>, %arg3: memref<256x64xbf16, #tpu.memory_space<vmem>>, %arg4: memref<64x128xbf16, #tpu.memory_space<vmem>>, %arg5: memref<128x16xbf16, #tpu.memory_space<vmem>>, %arg6: memref<1x528xf32, #tpu.memory_space<vmem>>, %arg7: memref<112x16xf32, #tpu.memory_space<vmem>>) attributes {dimension_semantics = [#tpu.dimension_semantics<parallel>], iteration_bounds = array<i64: 2>, scalar_prefetch = 0 : i64, scratch_operands = 0 : i64, tpu.core_type = #tpu.core_type<tc>, window_params = [{transform_indices = @transform_0, window_bounds = array<i64: 112, 32>}, {pipeline_mode = #tpu.pipeline_mode<synchronous>, transform_indices = @transform_1, window_bounds = array<i64: 32, 256>}, {pipeline_mode = #tpu.pipeline_mode<synchronous>, transform_indices = @transform_2, window_bounds = array<i64: 256, 64>}, {pipeline_mode = #tpu.pipeline_mode<synchronous>, transform_indices = @transform_3, window_bounds = array<i64: 64, 128>}, {pipeline_mode = #tpu.pipeline_mode<synchronous>, transform_indices = @transform_4, window_bounds = array<i64: 128, 16>}, {pipeline_mode = #tpu.pipeline_mode<synchronous>, transform_indices = @transform_5, window_bounds = array<i64: 1, 528>}, {transform_indices = @transform_6, window_bounds = array<i64: 112, 16>}]} {
    %c0 = arith.constant 0 : index
    %c0_0 = arith.constant 0 : index
    %0 = vector.load %arg6[%c0, %c0_0] : memref<1x528xf32, #tpu.memory_space<vmem>>, vector<1x256xf32>
    %c0_1 = arith.constant 0 : index
    %c256 = arith.constant 256 : index
    %1 = vector.load %arg6[%c0_1, %c256] : memref<1x528xf32, #tpu.memory_space<vmem>>, vector<1x64xf32>
    %c0_2 = arith.constant 0 : index
    %c384 = arith.constant 384 : index
    %2 = vector.load %arg6[%c0_2, %c384] : memref<1x528xf32, #tpu.memory_space<vmem>>, vector<1x128xf32>
    %c0_3 = arith.constant 0 : index
    %c512 = arith.constant 512 : index
    %3 = vector.load %arg6[%c0_3, %c512] : memref<1x528xf32, #tpu.memory_space<vmem>>, vector<1x16xf32>
    %c0_4 = arith.constant 0 : index
    %c0_5 = arith.constant 0 : index
    %4 = vector.load %arg1[%c0_4, %c0_5] : memref<112x32xf32, #tpu.memory_space<vmem>>, vector<112x32xf32>
    %5 = arith.truncf %4 : vector<112x32xf32> to vector<112x32xbf16>
    %c0_6 = arith.constant 0 : index
    %c0_7 = arith.constant 0 : index
    %6 = vector.load %arg2[%c0_6, %c0_7] : memref<32x256xbf16, #tpu.memory_space<vmem>>, vector<32x256xbf16>
    %cst = arith.constant dense<0.000000e+00> : vector<112x256xf32>
    %7 = tpu.matmul %5, %6, %cst {dimension_numbers = #tpu.dot_dimension_numbers<[1], [0], [0], [1], [0, 0, 1, 1], [], []>} : vector<112x32xbf16>, vector<32x256xbf16>, vector<112x256xf32> -> vector<112x256xf32>
    %8 = vector.broadcast %0 : vector<1x256xf32> to vector<112x256xf32>
    %9 = arith.addf %7, %8 : vector<112x256xf32>
    %cst_8 = arith.constant 0.000000e+00 : f32
    %10 = vector.broadcast %cst_8 : f32 to vector<112x256xf32>
    %11 = arith.maximumf %9, %10 : vector<112x256xf32>
    %12 = arith.truncf %11 : vector<112x256xf32> to vector<112x256xbf16>
    %c0_9 = arith.constant 0 : index
    %c0_10 = arith.constant 0 : index
    %13 = vector.load %arg3[%c0_9, %c0_10] : memref<256x64xbf16, #tpu.memory_space<vmem>>, vector<256x64xbf16>
    %cst_11 = arith.constant dense<0.000000e+00> : vector<112x64xf32>
    %14 = tpu.matmul %12, %13, %cst_11 {dimension_numbers = #tpu.dot_dimension_numbers<[1], [0], [0], [1], [0, 0, 1, 1], [], []>} : vector<112x256xbf16>, vector<256x64xbf16>, vector<112x64xf32> -> vector<112x64xf32>
    %15 = vector.broadcast %1 : vector<1x64xf32> to vector<112x64xf32>
    %16 = arith.addf %14, %15 : vector<112x64xf32>
    %cst_12 = arith.constant 0.000000e+00 : f32
    %17 = vector.broadcast %cst_12 : f32 to vector<112x64xf32>
    %18 = arith.maximumf %16, %17 : vector<112x64xf32>
    %19 = arith.truncf %18 : vector<112x64xf32> to vector<112x64xbf16>
    %c0_13 = arith.constant 0 : index
    %c0_14 = arith.constant 0 : index
    %20 = vector.load %arg4[%c0_13, %c0_14] : memref<64x128xbf16, #tpu.memory_space<vmem>>, vector<64x128xbf16>
    %cst_15 = arith.constant dense<0.000000e+00> : vector<112x128xf32>
    %21 = tpu.matmul %19, %20, %cst_15 {dimension_numbers = #tpu.dot_dimension_numbers<[1], [0], [0], [1], [0, 0, 1, 1], [], []>} : vector<112x64xbf16>, vector<64x128xbf16>, vector<112x128xf32> -> vector<112x128xf32>
    %22 = vector.broadcast %2 : vector<1x128xf32> to vector<112x128xf32>
    %23 = arith.addf %21, %22 : vector<112x128xf32>
    %cst_16 = arith.constant 0.000000e+00 : f32
    %24 = vector.broadcast %cst_16 : f32 to vector<112x128xf32>
    %25 = arith.maximumf %23, %24 : vector<112x128xf32>
    %26 = arith.truncf %25 : vector<112x128xf32> to vector<112x128xbf16>
    %c0_17 = arith.constant 0 : index
    %c0_18 = arith.constant 0 : index
    %27 = vector.load %arg5[%c0_17, %c0_18] : memref<128x16xbf16, #tpu.memory_space<vmem>>, vector<128x16xbf16>
    %cst_19 = arith.constant dense<0.000000e+00> : vector<112x16xf32>
    %28 = tpu.matmul %26, %27, %cst_19 {dimension_numbers = #tpu.dot_dimension_numbers<[1], [0], [0], [1], [0, 0, 1, 1], [], []>} : vector<112x128xbf16>, vector<128x16xbf16>, vector<112x16xf32> -> vector<112x16xf32>
    %29 = vector.broadcast %3 : vector<1x16xf32> to vector<112x16xf32>
    %30 = arith.addf %28, %29 : vector<112x16xf32>
    %c0_20 = arith.constant 0 : index
    %c0_21 = arith.constant 0 : index
    %31 = vector.load %arg7[%c0_20, %c0_21] : memref<112x16xf32, #tpu.memory_space<vmem>>, vector<112x16xf32>
    tpu.vector_store %arg7[%c0_20, %c0_21], %30 {strides = array<i32>} : memref<112x16xf32, #tpu.memory_space<vmem>>, vector<112x16xf32>,
    return
  }
  func.func @transform_0(%arg0: i32) -> (i32, i32) {
    %c0_i32 = arith.constant 0 : i32
    %c0_i32_0 = arith.constant 0 : i32
    return %arg0, %c0_i32 : i32, i32
  }
  func.func @transform_1(%arg0: i32) -> (i32, i32) {
    %c0_i32 = arith.constant 0 : i32
    %c0_i32_0 = arith.constant 0 : i32
    %c0_i32_1 = arith.constant 0 : i32
    return %c0_i32, %c0_i32_0 : i32, i32
  }
  func.func @transform_2(%arg0: i32) -> (i32, i32) {
    %c0_i32 = arith.constant 0 : i32
    %c0_i32_0 = arith.constant 0 : i32
    %c0_i32_1 = arith.constant 0 : i32
    return %c0_i32, %c0_i32_0 : i32, i32
  }
  func.func @transform_3(%arg0: i32) -> (i32, i32) {
    %c0_i32 = arith.constant 0 : i32
    %c0_i32_0 = arith.constant 0 : i32
    %c0_i32_1 = arith.constant 0 : i32
    return %c0_i32, %c0_i32_0 : i32, i32
  }
  func.func @transform_4(%arg0: i32) -> (i32, i32) {
    %c0_i32 = arith.constant 0 : i32
    %c0_i32_0 = arith.constant 0 : i32
    %c0_i32_1 = arith.constant 0 : i32
    return %c0_i32, %c0_i32_0 : i32, i32
  }
  func.func @transform_5(%arg0: i32) -> (i32, i32) {
    %c0_i32 = arith.constant 0 : i32
    %c0_i32_0 = arith.constant 0 : i32
    %c0_i32_1 = arith.constant 0 : i32
    return %c0_i32, %c0_i32_0 : i32, i32
  }
  func.func @transform_6(%arg0: i32) -> (i32, i32) {
    %c0_i32 = arith.constant 0 : i32
    %c0_i32_0 = arith.constant 0 : i32
    return %arg0, %c0_i32 : i32, i32
  }
}

</mosaic_0001>

<bundles_post_ra>
// kernel: mlp_forward.1
= control target key start
LH: loop header
LB: loop body
LE: loop exit
PB: predicated region body
PF: predicated region fallthrough
CT: control target
= control target key end

     0   :  { %s1663_s21 = smov 0   ;;  %s1665_s22 = smov 0   ;;  %s2031_s0 = inlined_call_operand.vmem [shape: f32[200,32], index: 0, kind: input, shape index: {}]   ;;  %s2032_s1 = inlined_call_operand.vmem [shape: bf16[32,256], index: 1, kind: input, shape index: {}]   ;;  %s2033_s2 = inlined_call_operand.vmem [shape: bf16[256,64], index: 2, kind: input, shape index: {}]   ;;  %s2034_s3 = inlined_call_operand.vmem [shape: bf16[64,128], index: 3, kind: input, shape index: {}]   ;;  %s2035_s4 = inlined_call_operand.vmem [shape: bf16[128,16], index: 4, kind: input, shape index: {}]   ;;  %s2036_s5 = inlined_call_operand.vmem [shape: f32[1,528], index: 5, kind: input, shape index: {}]   ;;  %s2037_s6 = inlined_call_operand.vmem [shape: f32[200,16], index: 6, kind: output, shape index: {}]  }
   0x1   :  { %s1667_s23 = smov 0  }
   0x2 LB: > { %s1676_s24 = sadd.s32 4294967295, %s1594_s23   ;;  %s1678_s25 = sadd.s32 1, %s1594_s23   ;;  %s1594_s23 = sphi %s1667_s23, %s2046_s23   ;;  %s1590_s22 = sphi %s1665_s22, %s2045_s22   ;;  %s1586_s21 = sphi %s1663_s21, %s2044_s21  }
   0x3   : > { %s151_s26 = ssub.s32 %s1594_s23, %s1678_s25  ;;  %s154_s27 = sadd.s32 1, %s1590_s22 }
   0x4   : > { %p152_p0 = scmp.eq.s32.totalorder %s151_s26, 0  ;;  %p164_p1 = scmp.ne.s32.totalorder %s1590_s22, %s1586_s21 }
   0x5   : > { %p165_p2 = scmp.eq.s32.totalorder %s1676_s24, 1  ;;  %p1241_p3 = scmp.ge.s32.totalorder %s1594_s23, 1 }
   0x6   : > { %s1686_s28 = scalar_select %p152_p0, %s1590_s22, %s154_s27  }
   0x7   : > { %p1688_p4 = por %p165_p2, %p164_p1  ;;  %p221_p5 = scmp.lt.s32.totalorder %s1594_s23, 3 }
   0x9   : > { %p222_p6 = pnand %p1241_p3, %p221_p5 }
   0xa   : > { %s1717_s26 = smul.u32 (!%p222_p6), 14, %s1676_s24 }
   0xb   : > { %225 = sbr.rel (%p222_p6) target bundleno = 748 (0x2ec), region = 44 }
   0xc   : > { %p259_p7 = scmp.lt.s32.totalorder (!%p222_p6), %s1717_s26, 24 }
  0x10   : > { %v1253_v0 = vld [vmem:[%s2032_s1 + $0x10] sm:$0xf]  ;;  %v1407_v1 = vld [vmem:[%s2032_s1 + $0x14] sm:$0xf0]  ;;  %v1406_v2 = vld [vmem:[%s2032_s1 + $0x14] sm:$0xf] }
  0x11   : > { %v1254_v3 = vor.u32 %v1407_v1, %v1253_v0  ;;  %v1255_v4 = vld [vmem:[%s2032_s1 + $0x18] sm:$0xf0]  ;;  %v1245_v5 = vld [vmem:[%s2032_s1] sm:$0xf]  ;;  %v1405_v6 = vld [vmem:[%s2032_s1 + $0x4] sm:$0xf0] }
  0x12   : > { %v1258_v7 = vor.u32 %v1406_v2, %v1255_v4  ;;  %v1404_v8 = vld [vmem:[%s2032_s1 + $0x4] sm:$0xf]  ;;  %v1247_v9 = vld [vmem:[%s2032_s1 + $0x8] sm:$0xf0]  ;;  %v1246_v10 = vor.u32 %v1405_v6, %v1245_v5  ;;  %s260_s27 = scalar_select %p259_p7, %s1717_s26, 24  ;;  %vm328_vm0 = vcmask 261120  }
  0x13   : > { %356 = vmatpush.bf16.msra.mxu0 %v1254_v3  ;;  %1437 = vmatpush.bf16.msra.mxu2 %v1254_v3  ;;  %v1250_v11 = vor.u32 %v1404_v8, %v1247_v9  ;;  %v1415_v21 = vld [vmem:[%s2033_s2 + $0x38] sm:$0xff]  ;;  %v1414_v23 = vld [vmem:[%s2033_s2 + $0x30] sm:$0xff]  ;;  %v1413_v25 = vld [vmem:[%s2033_s2 + $0x28] sm:$0xff]  ;;  %vm755_vm1 = vcmask 523264   ;;  %vm953_vm2 = vcmask 130048   ;;  %s1436_s10 = smul.u32 (%p1688_p4), 112, %s1676_s24 }
  0x14   : > { %400 = vmatpush.bf16.msra.mxu1 %v1258_v7  ;;  %1439 = vmatpush.bf16.msra.mxu3 %v1258_v7  ;;  %s1242_s30 = sshll.u32 %s260_s27, 3  ;;  %v1423_v22 = vld [vmem:[%s2033_s2 + $0x78] sm:$0xff]  ;;  %v1422_v24 = vld [vmem:[%s2033_s2 + $0x70] sm:$0xff]  ;;  %v1421_v26 = vld [vmem:[%s2033_s2 + $0x68] sm:$0xff] }
  0x15   : > { %s1724_s9 = scalar_lea.vmem %s2031_s0, %s1242_s30  ;;  %v1412_v32 = vld [vmem:[%s2033_s2 + $0x20] sm:$0xff]  ;;  %v1411_v35 = vld [vmem:[%s2033_s2 + $0x18] sm:$0xff]  ;;  %v1410_v37 = vld [vmem:[%s2033_s2 + $0x10] sm:$0xff]  ;;  %s1943_s13 = scalar_lea.vmem (%p1688_p4), %s2037_s6, %s1436_s10  }
  0x16   : > { %v278_v12 = vld [vmem:[%s1724_s9] sm:$0xff]  ;;  %v279_v13 = vld [vmem:[%s1724_s9 + $0x8] sm:$0xff]  ;;  %v280_v15 = vld [vmem:[%s1724_s9 + $0x10] sm:$0xff] }
  0x17   : > { %357 = vmatpush.bf16.msra.mxu0 %v1246_v10  ;;  %1438 = vmatpush.bf16.msra.mxu2 %v1246_v10  ;;  %v292_v14 = vpack.c.bf16 %v279_v13, %v278_v12  ;;  %v281_v16 = vld [vmem:[%s1724_s9 + $0x18] sm:$0xff]  ;;  %v286_v18 = vld [vmem:[%s1724_s9 + $0x40] sm:$0xff]  ;;  %v287_v19 = vld [vmem:[%s1724_s9 + $0x48] sm:$0xff] }
  0x18   : > { %401 = vmatpush.bf16.msra.mxu1 %v1250_v11  ;;  %1440 = vmatpush.bf16.msra.mxu3 %v1250_v11  ;;  %v293_v17 = vpack.c.bf16 %v281_v16, %v280_v15  ;;  %v296_v20 = vpack.c.bf16 %v287_v19, %v286_v18  ;;  %v282_v27 = vld [vmem:[%s1724_s9 + $0x20] sm:$0xff]  ;;  %v283_v28 = vld [vmem:[%s1724_s9 + $0x28] sm:$0xff]  ;;  %v288_v29 = vld [vmem:[%s1724_s9 + $0x50] sm:$0xff] }
  0x19   : > { %v289_v30 = vld [vmem:[%s1724_s9 + $0x58] sm:$0xff]  ;;  %v294_v31 = vpack.c.bf16 %v283_v28, %v282_v27  ;;  %v1420_v33 = vld [vmem:[%s2033_s2 + $0x60] sm:$0xff]  ;;  %v1418_v38 = vld [vmem:[%s2033_s2 + $0x50] sm:$0xff] }
  0x1a   : > { %1259 = vmatmul.msk.bf16.vlgmr.msra.gmra.mxu0 %vm328_vm0, %v292_v14  ;;  %1263 = vmatmul.msk.bf16.vlgmr.msra.gmra.mxu2 %vm328_vm0, %v296_v20  ;;  %v297_v34 = vpack.c.bf16 %v289_v30, %v288_v29  ;;  %v1419_v36 = vld [vmem:[%s2033_s2 + $0x58] sm:$0xff]  ;;  %v284_v39 = vld [vmem:[%s1724_s9 + $0x30] sm:$0xff]  ;;  %v290_v41 = vld [vmem:[%s1724_s9 + $0x60] sm:$0xff] }
  0x1b   : > { %1266 = vmatmul.msk.bf16.vlgmr.msra.gmra.mxu1 %vm328_vm0, %v292_v14  ;;  %1270 = vmatmul.msk.bf16.vlgmr.msra.gmra.mxu3 %vm328_vm0, %v296_v20  ;;  %v285_v40 = vld [vmem:[%s1724_s9 + $0x38] sm:$0xff]  ;;  %v291_v42 = vld [vmem:[%s1724_s9 + $0x68] sm:$0xff]  ;;  %v1408_v47 = vld [vmem:[%s2033_s2] sm:$0xff]  ;;  %s251_s9 = sand.u32 1, %s1586_s21   ;;  %s976_s21 = ssub.s32 (%p1688_p4), 25, %s1717_s26 }
  0x1c   : > { %611 = vmatpush.bf16.msrb.mxu2 %v1415_v21  ;;  %655 = vmatpush.bf16.msrb.mxu3 %v1423_v22  ;;  %v295_v43 = vpack.c.bf16 %v285_v40, %v284_v39  ;;  %v298_v44 = vpack.c.bf16 %v291_v42, %v290_v41  ;;  %v1409_v45 = vld [vmem:[%s2033_s2 + $0x8] sm:$0xff]  ;;  %v1416_v48 = vld [vmem:[%s2033_s2 + $0x40] sm:$0xff]  ;;  %s1441_s27 = smul.u32 112, %s251_s9  ;;  %p977_p8 = scmp.lt.s32.totalorder (%p1688_p4), %s976_s21, 14 }
  0x1d   : > { %v1417_v46 = vld [vmem:[%s2033_s2 + $0x48] sm:$0xff]  ;;  %v274_v49 = vld [vmem:[%s2036_s5] sm:$0x3] }
  0x1e   : > { %v1805_v52 = vperm.slane %v274_v49, 0  ;;  %v1807_v53 = vperm.slane %v274_v49, 1  ;;  %s1906_s8 = scalar_lea.vmem [#allocation2], %s1441_s27  }
  0x20   : > { %612 = vmatpush.bf16.msrb.mxu2 %v1414_v23  ;;  %656 = vmatpush.bf16.msrb.mxu3 %v1422_v24 }
  0x24   : > { %613 = vmatpush.bf16.msrb.mxu2 %v1413_v25  ;;  %657 = vmatpush.bf16.msrb.mxu3 %v1421_v26 }
  0x28   : > { %614 = vmatpush.bf16.msrb.mxu2 %v1412_v32  ;;  %658 = vmatpush.bf16.msrb.mxu3 %v1420_v33 }
  0x2a   : > { %1260 = vmatmul.msk.bf16.gmra.mxu0 %vm328_vm0, %v293_v17  ;;  %1264 = vmatmul.msk.bf16.gmra.mxu2 %vm328_vm0, %v297_v34 }
  0x2b   : > { %1267 = vmatmul.msk.bf16.gmra.mxu1 %vm328_vm0, %v293_v17  ;;  %1271 = vmatmul.msk.bf16.gmra.mxu3 %vm328_vm0, %v297_v34 }
  0x2c   : > { %615 = vmatpush.bf16.msrb.mxu2 %v1411_v35  ;;  %659 = vmatpush.bf16.msrb.mxu3 %v1419_v36 }
  0x30   : > { %616 = vmatpush.bf16.msrb.mxu2 %v1410_v37  ;;  %660 = vmatpush.bf16.msrb.mxu3 %v1418_v38 }
  0x34   : > { %617 = vmatpush.bf16.msrb.mxu2 %v1409_v45  ;;  %661 = vmatpush.bf16.msrb.mxu3 %v1417_v46 }
  0x38   : > { %618 = vmatpush.bf16.msrb.mxu2 %v1408_v47  ;;  %662 = vmatpush.bf16.msrb.mxu3 %v1416_v48  ;;  %v1427_v48 = vld [vmem:[%s2034_s3 + $0x18] sm:$0xff] }
  0x39   : > { %781 = vmatpush.bf16.msrb.mxu0 %v1427_v48 }
  0x3a   : > { %1261 = vmatmul.msk.bf16.gmra.mxu0 %vm328_vm0, %v294_v31  ;;  %1265 = vmatmul.msk.bf16.gmra.mxu2 %vm328_vm0, %v298_v44 }
  0x3b   : > { %1268 = vmatmul.msk.bf16.gmra.mxu1 %vm328_vm0, %v294_v31  ;;  %1272 = vmatmul.msk.bf16.gmra.mxu3 %vm328_vm0, %v298_v44 }
  0x4a   : > { %1262 = vmatmul.msk.bf16.gmra.mxu0 %vm328_vm0, %v295_v43 }
  0x4b   : > { %1269 = vmatmul.msk.bf16.gmra.mxu1 %vm328_vm0, %v295_v43 }
  0x97   : > { %v359_v50 = vpop.f32.mrf.mxu0 }
  0x98   : > { %v403_v51 = vpop.f32.mrf.mxu1  ;;  %v360_v54 = vadd.f32 %v359_v50, %v1805_v52 }
  0x99   : > { %v404_v55 = vadd.f32 %v403_v51, %v1807_v53 }
  0x9a   : > { %v438_v60 = vmax.f32 %v360_v54, 0.0 }
  0x9b   : > { %v439_v61 = vmax.f32 %v404_v55, 0.0 }
  0x9d   : > { %v379_v30 = vpop.f32.mrf.mxu2 }
  0x9e   : > { %v423_v31 = vpop.f32.mrf.mxu3  ;;  %v380_v51 = vadd.f32 %v379_v30, %v1805_v52 }
  0x9f   : > { %v361_v56 = vpop.f32.mrf.mxu0  ;;  %v424_v54 = vadd.f32 %v423_v31, %v1807_v53 }
  0xa0   : > { %v405_v57 = vpop.f32.mrf.mxu1  ;;  %v362_v58 = vadd.f32 %v361_v56, %v1805_v52 }
  0xa1   : > { %v406_v59 = vadd.f32 %v405_v57, %v1807_v53  ;;  %v454_v57 = vmax.f32 %v380_v51, 0.0 }
  0xa2   : > { %v440_v62 = vmax.f32 %v362_v58, 0.0  ;;  %v455_v58 = vmax.f32 %v424_v54, 0.0 }
  0xa3   : > { %v441_v63 = vmax.f32 %v406_v59, 0.0 }
  0xa4   : > { %v466_v0 = vpack.c.bf16 %v440_v62, %v438_v60 }
  0xa5   : > { %v467_v1 = vpack.c.bf16 %v441_v63, %v439_v61  ;;  %v381_v40 = vpop.f32.mrf.mxu2 }
  0xa6   : > { %619 = vmatmul.bf16.vlgmr.msrb.gmra.mxu2 %v466_v0  ;;  %v425_v41 = vpop.f32.mrf.mxu3  ;;  %v382_v55 = vadd.f32 %v381_v40, %v1805_v52 }
  0xa7   : > { %663 = vmatmul.bf16.vlgmr.msrb.gmra.mxu3 %v467_v1  ;;  %v364_v2 = vpop.f32.mrf.mxu0  ;;  %v426_v56 = vadd.f32 %v425_v41, %v1807_v53  ;;  %v1426_v1 = vld [vmem:[%s2034_s3 + $0x10] sm:$0xff] }
  0xa8   : > { %v408_v3 = vpop.f32.mrf.mxu1  ;;  %v365_v4 = vadd.f32 %v364_v2, %v1805_v52  ;;  %v456_v59 = vmax.f32 %v382_v55, 0.0  ;;  %782 = vmatpush.bf16.msrb.mxu0 %v1426_v1  ;;  %v1425_v2 = vld [vmem:[%s2034_s3 + $0x8] sm:$0xff] }
  0xa9   : > { %v409_v5 = vadd.f32 %v408_v3, %v1807_v53  ;;  %v457_v60 = vmax.f32 %v426_v56, 0.0 }
  0xaa   : > { %v442_v10 = vmax.f32 %v365_v4, 0.0  ;;  %v474_v61 = vpack.c.bf16 %v456_v59, %v454_v57 }
  0xab   : > { %v443_v11 = vmax.f32 %v409_v5, 0.0  ;;  %v475_v62 = vpack.c.bf16 %v457_v60, %v455_v58 }
  0xac   : > { %783 = vmatpush.bf16.msrb.mxu0 %v1425_v2 }
  0xad   : > { %v384_v49 = vpop.f32.mrf.mxu2 }
  0xae   : > { %v428_v50 = vpop.f32.mrf.mxu3  ;;  %v385_v3 = vadd.f32 %v384_v49, %v1805_v52 }
  0xaf   : > { %v366_v6 = vpop.f32.mrf.mxu0  ;;  %v429_v4 = vadd.f32 %v428_v50, %v1807_v53 }
  0xb0   : > { %v410_v7 = vpop.f32.mrf.mxu1  ;;  %v367_v8 = vadd.f32 %v366_v6, %v1805_v52 }
  0xb1   : > { %v411_v9 = vadd.f32 %v410_v7, %v1807_v53 }
  0xb2   : > { %v444_v12 = vmax.f32 %v367_v8, 0.0 }
  0xb3   : > { %v445_v13 = vmax.f32 %v411_v9, 0.0  ;;  %v458_v9 = vmax.f32 %v385_v3, 0.0 }
  0xb4   : > { %v468_v14 = vpack.c.bf16 %v444_v12, %v442_v10  ;;  %v459_v10 = vmax.f32 %v429_v4, 0.0 }
  0xb5   : > { %v469_v15 = vpack.c.bf16 %v445_v13, %v443_v11  ;;  %v386_v63 = vpop.f32.mrf.mxu2 }
  0xb6   : > { %624 = vmatmul.bf16.gmra.mxu2 %v468_v14  ;;  %v430_v0 = vpop.f32.mrf.mxu3  ;;  %v387_v5 = vadd.f32 %v386_v63, %v1805_v52 }
  0xb7   : > { %668 = vmatmul.bf16.gmra.mxu3 %v469_v15  ;;  %v369_v16 = vpop.f32.mrf.mxu0  ;;  %v431_v6 = vadd.f32 %v430_v0, %v1807_v53 }
  0xb8   : > { %v413_v17 = vpop.f32.mrf.mxu1  ;;  %v370_v18 = vadd.f32 %v369_v16, %v1805_v52  ;;  %v460_v11 = vmax.f32 %v387_v5, 0.0 }
  0xb9   : > { %v414_v19 = vadd.f32 %v413_v17, %v1807_v53  ;;  %v461_v12 = vmax.f32 %v431_v6, 0.0 }
  0xba   : > { %v446_v24 = vmax.f32 %v370_v18, 0.0  ;;  %v476_v13 = vpack.c.bf16 %v460_v11, %v458_v9  ;;  %v1435_v9 = vld [vmem:[%s2035_s4 + $0x38] sm:$0xff] }
  0xbb   : > { %v447_v25 = vmax.f32 %v414_v19, 0.0  ;;  %v477_v14 = vpack.c.bf16 %v461_v12, %v459_v10  ;;  %909 = vmatpush.bf16.msrb.mxu1 %v1435_v9 }
  0xbd   : > { %v389_v7 = vpop.f32.mrf.mxu2 }
  0xbe   : > { %v433_v8 = vpop.f32.mrf.mxu3  ;;  %v390_v17 = vadd.f32 %v389_v7, %v1805_v52 }
  0xbf   : > { %v371_v20 = vpop.f32.mrf.mxu0  ;;  %v434_v18 = vadd.f32 %v433_v8, %v1807_v53 }
  0xc0   : > { %v415_v21 = vpop.f32.mrf.mxu1  ;;  %v372_v22 = vadd.f32 %v371_v20, %v1805_v52 }
  0xc1   : > { %v416_v23 = vadd.f32 %v415_v21, %v1807_v53  ;;  %v462_v21 = vmax.f32 %v390_v17, 0.0 }
  0xc2   : > { %v448_v26 = vmax.f32 %v372_v22, 0.0  ;;  %v463_v22 = vmax.f32 %v434_v18, 0.0 }
  0xc3   : > { %v449_v27 = vmax.f32 %v416_v23, 0.0 }
  0xc4   : > { %v470_v28 = vpack.c.bf16 %v448_v26, %v446_v24 }
  0xc5   : > { %v471_v29 = vpack.c.bf16 %v449_v27, %v447_v25  ;;  %v391_v15 = vpop.f32.mrf.mxu2  ;;  %v1424_v27 = vld [vmem:[%s2034_s3] sm:$0xff] }
  0xc6   : > { %629 = vmatmul.bf16.gmra.mxu2 %v470_v28  ;;  %v435_v16 = vpop.f32.mrf.mxu3  ;;  %v392_v19 = vadd.f32 %v391_v15, %v1805_v52  ;;  %784 = vmatpush.bf16.msrb.mxu0 %v1424_v27  ;;  %v1431_v27 = vld [vmem:[%s2035_s4 + $0x18] sm:$0xff] }
  0xc7   : > { %673 = vmatmul.bf16.gmra.mxu3 %v471_v29  ;;  %v374_v32 = vpop.f32.mrf.mxu0  ;;  %v436_v20 = vadd.f32 %v435_v16, %v1807_v53 }
  0xc8   : > { %v418_v33 = vpop.f32.mrf.mxu1  ;;  %v375_v34 = vadd.f32 %v374_v32, %v1805_v52  ;;  %v464_v23 = vmax.f32 %v392_v19, 0.0 }
  0xc9   : > { %v419_v35 = vadd.f32 %v418_v33, %v1807_v53  ;;  %v465_v24 = vmax.f32 %v436_v20, 0.0 }
  0xca   : > { %v450_v42 = vmax.f32 %v375_v34, 0.0  ;;  %v478_v25 = vpack.c.bf16 %v464_v23, %v462_v21 }
  0xcb   : > { %v451_v43 = vmax.f32 %v419_v35, 0.0  ;;  %v479_v26 = vpack.c.bf16 %v465_v24, %v463_v22  ;;  %v1433_v22 = vld [vmem:[%s2035_s4 + $0x28] sm:$0xff] }
  0xcf   : > { %v376_v36 = vpop.f32.mrf.mxu0 }
  0xd0   : > { %v420_v37 = vpop.f32.mrf.mxu1  ;;  %v377_v38 = vadd.f32 %v376_v36, %v1805_v52  ;;  %v1852_v52 = vld [vmem:[%s2036_s5 + $0x2] ss:$0 sm:$0xff] }
  0xd1   : > { %v421_v39 = vadd.f32 %v420_v37, %v1807_v53 }
  0xd2   : > { %v452_v44 = vmax.f32 %v377_v38, 0.0 }
  0xd3   : > { %v453_v45 = vmax.f32 %v421_v39, 0.0 }
  0xd4   : > { %v472_v46 = vpack.c.bf16 %v452_v44, %v450_v42 }
  0xd5   : > { %v473_v47 = vpack.c.bf16 %v453_v45, %v451_v43 }
  0xd6   : > { %634 = vmatmul.bf16.gmra.mxu2 %v472_v46 }
  0xd7   : > { %678 = vmatmul.bf16.gmra.mxu3 %v473_v47 }
  0xe6   : > { %639 = vmatmul.bf16.gmra.mxu2 %v474_v61 }
  0xe7   : > { %683 = vmatmul.bf16.gmra.mxu3 %v475_v62 }
  0xf6   : > { %644 = vmatmul.bf16.gmra.mxu2 %v476_v13  ;;  %v1434_v13 = vld [vmem:[%s2035_s4 + $0x30] sm:$0xff] }
  0xf7   : > { %688 = vmatmul.bf16.gmra.mxu3 %v477_v14  ;;  %910 = vmatpush.bf16.msrb.mxu1 %v1434_v13 }
  0xfb   : > { %911 = vmatpush.bf16.msrb.mxu1 %v1433_v22 }
 0x106   : > { %649 = vmatmul.bf16.gmra.mxu2 %v478_v25  ;;  %v1432_v25 = vld [vmem:[%s2035_s4 + $0x20] sm:$0xff] }
 0x107   : > { %693 = vmatmul.bf16.gmra.mxu3 %v479_v26  ;;  %912 = vmatpush.bf16.msrb.mxu1 %v1432_v25 }
 0x10b   : > { %913 = vmatpush.bf16.msrb.mxu1 %v1431_v27 }
 0x129   : > { %v620_v28 = vpop.f32.mrf.mxu2 }
 0x12a   : > { %v664_v29 = vpop.f32.mrf.mxu3  ;;  %v621_v53 = vadd.f32 %v1852_v52, %v620_v28 }
 0x12c   : > { %v665_v32 = vadd.f32 %v664_v29, %v621_v53 }
 0x12e   : > { %v699_v35 = vmax.f32 %v665_v32, 0.0 }
 0x131   : > { %v622_v30 = vpop.f32.mrf.mxu2 }
 0x132   : > { %v666_v31 = vpop.f32.mrf.mxu3  ;;  %v623_v33 = vadd.f32 %v1852_v52, %v622_v30 }
 0x134   : > { %v667_v34 = vadd.f32 %v666_v31, %v623_v33  ;;  %v1430_v31 = vld [vmem:[%s2035_s4 + $0x10] sm:$0xff] }
 0x135   : > { %914 = vmatpush.bf16.msrb.mxu1 %v1430_v31 }
 0x136   : > { %v700_v36 = vmax.f32 %v667_v34, 0.0 }
 0x138   : > { %v713_v37 = vpack.c.bf16 %v700_v36, %v699_v35  ;;  %v1429_v35 = vld [vmem:[%s2035_s4 + $0x8] sm:$0xff] }
 0x139   : > { %v625_v38 = vpop.f32.mrf.mxu2  ;;  %915 = vmatpush.bf16.msrb.mxu1 %v1429_v35  ;;  %v1533_v35 = vld [vmem:[%s2036_s5 + $0x4] ss:$0 sm:$0xff] }
 0x13a   : > { %v669_v39 = vpop.f32.mrf.mxu3  ;;  %1353 = vmatmul.msk.bf16.vlgmr.msrb.gmra.mxu0 %vm755_vm1, %v713_v37  ;;  %v626_v40 = vadd.f32 %v1852_v52, %v625_v38 }
 0x13c   : > { %v670_v43 = vadd.f32 %v669_v39, %v626_v40 }
 0x13e   : > { %v701_v46 = vmax.f32 %v670_v43, 0.0 }
 0x141   : > { %v627_v41 = vpop.f32.mrf.mxu2 }
 0x142   : > { %v671_v42 = vpop.f32.mrf.mxu3  ;;  %v628_v44 = vadd.f32 %v1852_v52, %v627_v41 }
 0x144   : > { %v672_v45 = vadd.f32 %v671_v42, %v628_v44 }
 0x146   : > { %v702_v47 = vmax.f32 %v672_v45, 0.0 }
 0x148   : > { %v714_v48 = vpack.c.bf16 %v702_v47, %v701_v46 }
 0x149   : > { %v630_v49 = vpop.f32.mrf.mxu2 }
 0x14a   : > { %v674_v50 = vpop.f32.mrf.mxu3  ;;  %1354 = vmatmul.msk.bf16.gmra.mxu0 %vm755_vm1, %v714_v48  ;;  %v631_v51 = vadd.f32 %v1852_v52, %v630_v49  ;;  %v1428_v48 = vld [vmem:[%s2035_s4] sm:$0xff] }
 0x14b   : > { %916 = vmatpush.bf16.msrb.mxu1 %v1428_v48 }
 0x14c   : > { %v675_v56 = vadd.f32 %v674_v50, %v631_v51  ;;  %v1532_v50 = vld [vmem:[%s2036_s5 + $0x3] ss:$0 sm:$0xff] }
 0x14e   : > { %v703_v59 = vmax.f32 %v675_v56, 0.0 }
 0x151   : > { %v632_v54 = vpop.f32.mrf.mxu2 }
 0x152   : > { %v676_v55 = vpop.f32.mrf.mxu3  ;;  %v633_v57 = vadd.f32 %v1852_v52, %v632_v54 }
 0x154   : > { %v677_v58 = vadd.f32 %v676_v55, %v633_v57 }
 0x156   : > { %v704_v60 = vmax.f32 %v677_v58, 0.0 }
 0x158   : > { %v715_v61 = vpack.c.bf16 %v704_v60, %v703_v59 }
 0x159   : > { %v635_v62 = vpop.f32.mrf.mxu2 }
 0x15a   : > { %v679_v63 = vpop.f32.mrf.mxu3  ;;  %1355 = vmatmul.msk.bf16.gmra.mxu0 %vm755_vm1, %v715_v61  ;;  %v636_v0 = vadd.f32 %v1852_v52, %v635_v62 }
 0x15c   : > { %v680_v3 = vadd.f32 %v679_v63, %v636_v0 }
 0x15e   : > { %v705_v6 = vmax.f32 %v680_v3, 0.0 }
 0x161   : > { %v637_v1 = vpop.f32.mrf.mxu2 }
 0x162   : > { %v681_v2 = vpop.f32.mrf.mxu3  ;;  %v638_v4 = vadd.f32 %v1852_v52, %v637_v1 }
 0x164   : > { %v682_v5 = vadd.f32 %v681_v2, %v638_v4 }
 0x166   : > { %v706_v7 = vmax.f32 %v682_v5, 0.0 }
 0x168   : > { %v716_v8 = vpack.c.bf16 %v706_v7, %v705_v6 }
 0x169   : > { %v640_v10 = vpop.f32.mrf.mxu2 }
 0x16a   : > { %v684_v11 = vpop.f32.mrf.mxu3  ;;  %1356 = vmatmul.msk.bf16.gmra.mxu0 %vm755_vm1, %v716_v8  ;;  %v641_v12 = vadd.f32 %v1852_v52, %v640_v10 }
 0x16c   : > { %v685_v16 = vadd.f32 %v684_v11, %v641_v12 }
 0x16e   : > { %v707_v19 = vmax.f32 %v685_v16, 0.0 }
 0x171   : > { %v642_v14 = vpop.f32.mrf.mxu2 }
 0x172   : > { %v686_v15 = vpop.f32.mrf.mxu3  ;;  %v643_v17 = vadd.f32 %v1852_v52, %v642_v14 }
 0x174   : > { %v687_v18 = vadd.f32 %v686_v15, %v643_v17 }
 0x176   : > { %v708_v20 = vmax.f32 %v687_v18, 0.0 }
 0x178   : > { %v717_v21 = vpack.c.bf16 %v708_v20, %v707_v19 }
 0x179   : > { %v645_v23 = vpop.f32.mrf.mxu2 }
 0x17a   : > { %v689_v24 = vpop.f32.mrf.mxu3  ;;  %1357 = vmatmul.msk.bf16.gmra.mxu0 %vm755_vm1, %v717_v21  ;;  %v646_v26 = vadd.f32 %v1852_v52, %v645_v23 }
 0x17c   : > { %v690_v53 = vadd.f32 %v689_v24, %v646_v26 }
 0x17e   : > { %v709_v33 = vmax.f32 %v690_v53, 0.0 }
 0x181   : > { %v647_v28 = vpop.f32.mrf.mxu2 }
 0x182   : > { %v691_v29 = vpop.f32.mrf.mxu3  ;;  %v648_v30 = vadd.f32 %v1852_v52, %v647_v28 }
 0x184   : > { %v692_v32 = vadd.f32 %v691_v29, %v648_v30 }
 0x186   : > { %v710_v34 = vmax.f32 %v692_v32, 0.0 }
 0x188   : > { %v718_v36 = vpack.c.bf16 %v710_v34, %v709_v33 }
 0x189   : > { %v650_v37 = vpop.f32.mrf.mxu2 }
 0x18a   : > { %v694_v38 = vpop.f32.mrf.mxu3  ;;  %1358 = vmatmul.msk.bf16.gmra.mxu0 %vm755_vm1, %v718_v36  ;;  %v651_v39 = vadd.f32 %v1852_v52, %v650_v37 }
 0x18c   : > { %v695_v41 = vadd.f32 %v694_v38, %v651_v39 }
 0x18e   : > { %v711_v45 = vmax.f32 %v695_v41, 0.0 }
 0x191   : > { %v652_v40 = vpop.f32.mrf.mxu2 }
 0x192   : > { %v653_v42 = vadd.f32 %v1852_v52, %v652_v40  ;;  %v696_v43 = vpop.f32.mrf.mxu3 }
 0x194   : > { %v697_v44 = vadd.f32 %v696_v43, %v653_v42 }
 0x196   : > { %v712_v46 = vmax.f32 %v697_v44, 0.0 }
 0x198   : > { %v719_v47 = vpack.c.bf16 %v712_v46, %v711_v45 }
 0x19a   : > { %1359 = vmatmul.msk.bf16.gmra.mxu0 %vm755_vm1, %v719_v47 }
 0x1b7   : > { %v786_v49 = vpop.f32.mrf.mxu0 }
 0x1b8   : > { %v787_v51 = vadd.f32 %v1532_v50, %v786_v49 }
 0x1ba   : > { %v821_v55 = vmax.f32 %v787_v51, 0.0 }
 0x1bf   : > { %v788_v54 = vpop.f32.mrf.mxu0 }
 0x1c0   : > { %v789_v52 = vadd.f32 %v1532_v50, %v788_v54 }
 0x1c2   : > { %v822_v56 = vmax.f32 %v789_v52, 0.0 }
 0x1c4   : > { %v835_v57 = vpack.c.bf16 %v822_v56, %v821_v55 }
 0x1c6   : > { %917 = vmatmul.bf16.vlgmr.msrb.gmra.mxu1 %v835_v57 }
 0x1c7   : > { %v791_v58 = vpop.f32.mrf.mxu0 }
 0x1c8   : > { %v792_v59 = vadd.f32 %v1532_v50, %v791_v58 }
 0x1ca   : > { %v823_v62 = vmax.f32 %v792_v59, 0.0 }
 0x1cf   : > { %v793_v60 = vpop.f32.mrf.mxu0 }
 0x1d0   : > { %v794_v61 = vadd.f32 %v1532_v50, %v793_v60 }
 0x1d2   : > { %v824_v63 = vmax.f32 %v794_v61, 0.0 }
 0x1d4   : > { %v836_v0 = vpack.c.bf16 %v824_v63, %v823_v62 }
 0x1d6   : > { %922 = vmatmul.bf16.gmra.mxu1 %v836_v0 }
 0x1d7   : > { %v796_v1 = vpop.f32.mrf.mxu0 }
 0x1d8   : > { %v797_v2 = vadd.f32 %v1532_v50, %v796_v1 }
 0x1da   : > { %v825_v5 = vmax.f32 %v797_v2, 0.0 }
 0x1df   : > { %v798_v3 = vpop.f32.mrf.mxu0 }
 0x1e0   : > { %v799_v4 = vadd.f32 %v1532_v50, %v798_v3 }
 0x1e2   : > { %v826_v6 = vmax.f32 %v799_v4, 0.0 }
 0x1e4   : > { %v837_v7 = vpack.c.bf16 %v826_v6, %v825_v5 }
 0x1e6   : > { %927 = vmatmul.bf16.gmra.mxu1 %v837_v7 }
 0x1e7   : > { %v801_v8 = vpop.f32.mrf.mxu0 }
 0x1e8   : > { %v802_v9 = vadd.f32 %v1532_v50, %v801_v8 }
 0x1ea   : > { %v827_v12 = vmax.f32 %v802_v9, 0.0 }
 0x1ef   : > { %v803_v10 = vpop.f32.mrf.mxu0 }
 0x1f0   : > { %v804_v11 = vadd.f32 %v1532_v50, %v803_v10 }
 0x1f2   : > { %v828_v13 = vmax.f32 %v804_v11, 0.0 }
 0x1f4   : > { %v838_v14 = vpack.c.bf16 %v828_v13, %v827_v12 }
 0x1f6   : > { %932 = vmatmul.bf16.gmra.mxu1 %v838_v14 }
 0x1f7   : > { %v806_v15 = vpop.f32.mrf.mxu0 }
 0x1f8   : > { %v807_v16 = vadd.f32 %v1532_v50, %v806_v15 }
 0x1fa   : > { %v829_v19 = vmax.f32 %v807_v16, 0.0 }
 0x1ff   : > { %v808_v17 = vpop.f32.mrf.mxu0 }
 0x200   : > { %v809_v18 = vadd.f32 %v1532_v50, %v808_v17 }
 0x202   : > { %v830_v20 = vmax.f32 %v809_v18, 0.0 }
 0x204   : > { %v839_v21 = vpack.c.bf16 %v830_v20, %v829_v19 }
 0x206   : > { %937 = vmatmul.bf16.gmra.mxu1 %v839_v21 }
 0x207   : > { %v811_v22 = vpop.f32.mrf.mxu0 }
 0x208   : > { %v812_v23 = vadd.f32 %v1532_v50, %v811_v22 }
 0x20a   : > { %v831_v26 = vmax.f32 %v812_v23, 0.0 }
 0x20f   : > { %v813_v24 = vpop.f32.mrf.mxu0 }
 0x210   : > { %v814_v25 = vadd.f32 %v1532_v50, %v813_v24 }
 0x212   : > { %v832_v27 = vmax.f32 %v814_v25, 0.0 }
 0x214   : > { %v840_v28 = vpack.c.bf16 %v832_v27, %v831_v26 }
 0x216   : > { %942 = vmatmul.bf16.gmra.mxu1 %v840_v28 }
 0x217   : > { %v816_v29 = vpop.f32.mrf.mxu0 }
 0x218   : > { %v817_v53 = vadd.f32 %v1532_v50, %v816_v29 }
 0x21a   : > { %v833_v32 = vmax.f32 %v817_v53, 0.0 }
 0x21f   : > { %v818_v30 = vpop.f32.mrf.mxu0 }
 0x220   : > { %v819_v31 = vadd.f32 %v1532_v50, %v818_v30 }
 0x222   : > { %v834_v33 = vmax.f32 %v819_v31, 0.0 }
 0x224   : > { %v841_v34 = vpack.c.bf16 %v834_v33, %v833_v32 }
 0x226   : > { %947 = vmatmul.bf16.gmra.mxu1 %v841_v34 }
 0x243   : > { %v918_v36 = vpop.f32.mrf.mxu1 }
 0x244   : > { %v919_v37 = vadd.f32 %v1533_v35, %v918_v36 }
 0x246   : > { %954 = vst.msk [vmem:[%s1906_s8] sm:$0xff] %vm953_vm2, %v919_v37 }
 0x24b   : > { %v920_v38 = vpop.f32.mrf.mxu1 }
 0x24c   : > { %v921_v39 = vadd.f32 %v1533_v35, %v920_v38 }
 0x24e   : > { %955 = vst.msk [vmem:[%s1906_s8 + $0x8] sm:$0xff] %vm953_vm2, %v921_v39 }
 0x253   : > { %v923_v40 = vpop.f32.mrf.mxu1 }
 0x254   : > { %v924_v41 = vadd.f32 %v1533_v35, %v923_v40 }
 0x256   : > { %956 = vst.msk [vmem:[%s1906_s8 + $0x10] sm:$0xff] %vm953_vm2, %v924_v41 }
 0x25b   : > { %v925_v42 = vpop.f32.mrf.mxu1 }
 0x25c   : > { %v926_v43 = vadd.f32 %v1533_v35, %v925_v42 }
 0x25e   : > { %957 = vst.msk [vmem:[%s1906_s8 + $0x18] sm:$0xff] %vm953_vm2, %v926_v43 }
 0x263   : > { %v928_v44 = vpop.f32.mrf.mxu1 }
 0x264   : > { %v929_v45 = vadd.f32 %v1533_v35, %v928_v44 }
 0x266   : > { %958 = vst.msk [vmem:[%s1906_s8 + $0x20] sm:$0xff] %vm953_vm2, %v929_v45 }
 0x26b   : > { %v930_v46 = vpop.f32.mrf.mxu1 }
 0x26c   : > { %v931_v47 = vadd.f32 %v1533_v35, %v930_v46 }
 0x26e   : > { %959 = vst.msk [vmem:[%s1906_s8 + $0x28] sm:$0xff] %vm953_vm2, %v931_v47 }
 0x273   : > { %v933_v48 = vpop.f32.mrf.mxu1 }
 0x274   : > { %v934_v49 = vadd.f32 %v1533_v35, %v933_v48 }
 0x276   : > { %960 = vst.msk [vmem:[%s1906_s8 + $0x30] sm:$0xff] %vm953_vm2, %v934_v49 }
 0x27b   : > { %v935_v50 = vpop.f32.mrf.mxu1 }
 0x27c   : > { %v936_v51 = vadd.f32 %v1533_v35, %v935_v50 }
 0x27e   : > { %961 = vst.msk [vmem:[%s1906_s8 + $0x38] sm:$0xff] %vm953_vm2, %v936_v51 }
 0x283   : > { %v938_v54 = vpop.f32.mrf.mxu1 }
 0x284   : > { %v939_v52 = vadd.f32 %v1533_v35, %v938_v54 }
 0x286   : > { %962 = vst.msk [vmem:[%s1906_s8 + $0x40] sm:$0xff] %vm953_vm2, %v939_v52 }
 0x28b   : > { %v940_v55 = vpop.f32.mrf.mxu1 }
 0x28c   : > { %v941_v56 = vadd.f32 %v1533_v35, %v940_v55 }
 0x28e   : > { %963 = vst.msk [vmem:[%s1906_s8 + $0x48] sm:$0xff] %vm953_vm2, %v941_v56 }
 0x293   : > { %v943_v57 = vpop.f32.mrf.mxu1 }
 0x294   : > { %v944_v58 = vadd.f32 %v1533_v35, %v943_v57 }
 0x296   : > { %964 = vst.msk [vmem:[%s1906_s8 + $0x50] sm:$0xff] %vm953_vm2, %v944_v58 }
 0x29b   : > { %v945_v59 = vpop.f32.mrf.mxu1 }
 0x29c   : > { %v946_v60 = vadd.f32 %v1533_v35, %v945_v59 }
 0x29e   : > { %965 = vst.msk [vmem:[%s1906_s8 + $0x58] sm:$0xff] %vm953_vm2, %v946_v60 }
 0x2a3   : > { %v948_v61 = vpop.f32.mrf.mxu1 }
 0x2a4   : > { %v949_v62 = vadd.f32 %v1533_v35, %v948_v61 }
 0x2a6   : > { %966 = vst.msk [vmem:[%s1906_s8 + $0x60] sm:$0xff] %vm953_vm2, %v949_v62 }
 0x2aa   : > { %974 = sbr.rel (!%p1688_p4) target bundleno = 748 (0x2ec), region = 48 }
 0x2ab   : > { %v950_v63 = vpop.f32.mrf.mxu1 }
 0x2ac   : > { %v951_v0 = vadd.f32 %v1533_v35, %v950_v63 }
 0x2ae   : > { %967 = vst.msk [vmem:[%s1906_s8 + $0x68] sm:$0xff] %vm953_vm2, %v951_v0 }
 0x2af   : > { %s2048_s21 = smov (!%p977_p8, %s976_s21), 14 }
 0x2b0   : > { %s1392_s14 = sshll.u32 %s2048_s21, 3 }
 0x2b1   : > { %p1395_p9 = scmp.eq.s32.totalorder %s1392_s14, 0 }
 0x2b2   : > { %1534 = sdivrem.u32 (!%p1395_p9), %s2048_s21, 14 }
 0x2b3   : > { %985 = sbr.rel (%p1395_p9) target bundleno = 748 (0x2ec), region = 52 }
 0x2bb   : > { %s1949_s29 = spop.drf %1534 }
 0x2bc   : > { %s1536_s15 = spop.drf %1534  ;;  %p1396_p10 = scmp.le.s32.totalorder %s1949_s29, 0 }
 0x2bd   : > { %s2039_s24 = smov (!%p1396_p10), %s1943_s13  ;;  %s2040_s26 = smov (!%p1396_p10), %s1906_s8 }
 0x2be   : > { %1194 = sbr.rel (%p1396_p10) target bundleno = 722 (0x2d2), region = 128  ;;  %s1958_s16 = smov (!%p1396_p10), 0  }
 0x2bf   : > { %s1960_s17 = smov (!%p1396_p10), 0  }
 0x2c3 LB: >> { %v1076_v1 = vld [vmem:[%s1602_s26] sm:$0xff]  ;;  %v1078_v2 = vld [vmem:[%s1602_s26 + $0x8] sm:$0xff]  ;;  %v1080_v3 = vld [vmem:[%s1602_s26 + $0x10] sm:$0xff]  ;;  %s1104_s18 = sadd.s32 1, %s1606_s16  ;;  %s1070_s17 = sadd.s32 1, %s1610_s17   ;;  %s1610_s17 = sphi %s1960_s17, %s1070_s17   ;;  %s1606_s16 = sphi %s1958_s16, %s2043_s16   ;;  %s1602_s26 = sphi %s2040_s26, %s2042_s26   ;;  %s1598_s24 = sphi %s2039_s24, %s2041_s24  }
 0x2c4   : >> { %1077 = vst [vmem:[%s1598_s24] sm:$0xff] %v1076_v1  ;;  %v1082_v4 = vld [vmem:[%s1602_s26 + $0x18] sm:$0xff]  ;;  %p1105_p11 = scmp.ge.s32.totalorder %s1104_s18, %s1949_s29  ;;  %v1084_v5 = vld [vmem:[%s1602_s26 + $0x20] sm:$0xff]  ;;  %v1086_v6 = vld [vmem:[%s1602_s26 + $0x28] sm:$0xff]  ;;  %p1069_p12 = scmp.ge.s32.totalorder %s1070_s17, %s1949_s29 }
 0x2c5   : >> { %1079 = vst [vmem:[%s1598_s24 + $0x8] sm:$0xff] %v1078_v2  ;;  %v1088_v7 = vld [vmem:[%s1602_s26 + $0x30] sm:$0xff]  ;;  %v1090_v8 = vld [vmem:[%s1602_s26 + $0x38] sm:$0xff]  ;;  %v1092_v9 = vld [vmem:[%s1602_s26 + $0x40] sm:$0xff] }
 0x2c6   : >> { %1081 = vst [vmem:[%s1598_s24 + $0x10] sm:$0xff] %v1080_v3  ;;  %s2050_s18 = smov (%p1105_p11, %s1104_s18), 0  ;;  %v1094_v10 = vld [vmem:[%s1602_s26 + $0x48] sm:$0xff]  ;;  %v1096_v11 = vld [vmem:[%s1602_s26 + $0x50] sm:$0xff]  ;;  %v1098_v12 = vld [vmem:[%s1602_s26 + $0x58] sm:$0xff] }
 0x2c7   : >> { %1083 = vst [vmem:[%s1598_s24 + $0x18] sm:$0xff] %v1082_v4  ;;  %s1107_s19 = smul.u32 112, %s2050_s18  ;;  %v1100_v13 = vld [vmem:[%s1602_s26 + $0x60] sm:$0xff]  ;;  %v1102_v14 = vld [vmem:[%s1602_s26 + $0x68] sm:$0xff]  ;;  %s2043_s16 = smov %s2050_s18 }
 0x2c8   : >> { %1085 = vst [vmem:[%s1598_s24 + $0x20] sm:$0xff] %v1084_v5 }
 0x2c9   : >> { %1087 = vst [vmem:[%s1598_s24 + $0x28] sm:$0xff] %v1086_v6  ;;  %s1109_s20 = scalar_lea.vmem %s1906_s8, %s1107_s19 [#allocation2]   ;;  %s1110_s23 = scalar_lea.vmem %s1943_s13, %s1107_s19  }
 0x2ca   : >> { %1089 = vst [vmem:[%s1598_s24 + $0x30] sm:$0xff] %v1088_v7  ;;  %s2042_s26 = smov %s1109_s20 }
 0x2cb   : >> { %1091 = vst [vmem:[%s1598_s24 + $0x38] sm:$0xff] %v1090_v8 }
 0x2cc   : >> { %1093 = vst [vmem:[%s1598_s24 + $0x40] sm:$0xff] %v1092_v9 }
 0x2cd   : >> { %1095 = vst [vmem:[%s1598_s24 + $0x48] sm:$0xff] %v1094_v10  ;;  %1072 = sbr.rel (!%p1069_p12) target bundleno = 707 (0x2c3), region = 134 }
 0x2ce   : >> { %1097 = vst [vmem:[%s1598_s24 + $0x50] sm:$0xff] %v1096_v11 }
 0x2cf   : >> { %1099 = vst [vmem:[%s1598_s24 + $0x58] sm:$0xff] %v1098_v12 }
 0x2d0   : >> { %1101 = vst [vmem:[%s1598_s24 + $0x60] sm:$0xff] %v1100_v13 }
 0x2d1   : >> { %1103 = vst [vmem:[%s1598_s24 + $0x68] sm:$0xff] %v1102_v14  ;;  %s2041_s24 = smov %s1110_s23 }
 0x2d2 PF: > { %1537 = sdivrem.u32 %s2048_s21, 14 }
 0x2d3   : > { %s1397_s9 = smul.u32 112, %s1949_s29 }
 0x2d5   : > { %s2016_s27 = scalar_lea.vmem %s1906_s8, %s1397_s9 [#allocation2]   ;;  %s1117_s30 = scalar_lea.vmem %s1943_s13, %s1397_s9  }
 0x2db   : > { %s1538_s7 = spop.drf %1537 }
 0x2dc   : > { %s1539_s10 = spop.drf %1537 }
 0x2dd   : > { %p1399_p13 = scmp.le.s32.totalorder %s1539_s10, 0 }
 0x2de   : > { %s1612_s11 = smov (!%p1399_p13), %s1117_s30   ;;  %s1616_s12 = smov (!%p1399_p13), %s2016_s27  }
 0x2df   : > { %1208 = sbr.rel (%p1399_p13) target bundleno = 748 (0x2ec), region = 139  ;;  %s1620_s14 = smov (!%p1399_p13), 0  }
 0x2e0   : > { %s1624_s15 = smov (!%p1399_p13), 0  }
 0x2e4 LB: >> { %v1127_v15 = vld [vmem:[%s1618_s12] sm:$0xff]  ;;  %s1129_s8 = sadd.s32 1, %s1622_s14  ;;  %s1121_s15 = sadd.s32 1, %s1626_s15   ;;  %s1626_s15 = sphi %s1624_s15, %s1121_s15   ;;  %s1622_s14 = sphi %s1620_s14, %s1621_s14   ;;  %s1618_s12 = sphi %s1616_s12, %s1134_s12   ;;  %s1614_s11 = sphi %s1612_s11, %s1135_s11  }
 0x2e5   : >> { %1128 = vst [vmem:[%s1614_s11] sm:$0xff] %v1127_v15  ;;  %p1130_p0 = scmp.ge.s32.totalorder %s1129_s8, %s1539_s10  ;;  %p1120_p1 = scmp.ge.s32.totalorder %s1121_s15, %s1539_s10 }
 0x2e7   : >> { %s2052_s8 = smov (%p1130_p0, %s1129_s8), 0  ;;  %1123 = sbr.rel (!%p1120_p1) target bundleno = 740 (0x2e4), region = 145 }
 0x2e8   : >> { %s1400_s21 = sshll.u32 %s2052_s8, 3  ;;  %s1621_s14 = smov %s2052_s8  }
 0x2e9   : >> { %s1134_s12 = scalar_lea.vmem %s2016_s27, %s1400_s21 [#allocation2]   ;;  %s1135_s11 = scalar_lea.vmem %s1117_s30, %s1400_s21  }
 0x2ec PF: > { %p13_p2 = scmp.ge.s32.totalorder %s1678_s25, 4   ;;  %s2044_s21 = smov %s1590_s22 }
 0x2ed   : > { %s2045_s22 = smov %s1686_s28  ;;  %s2046_s23 = smov %s1678_s25 }
 0x2ee   :  { %15 = sbr.rel (!%p13_p2) target bundleno = 2 (0x2), region = 156 }

</bundles_post_ra>
